<compile_context>
chip_gen: v7x
topology: tpu7x:2x2x1
jax: 0.10.0
libtpu: 0.0.40
codegen_flags: <defaults>
</compile_context>

<pallas_src>
import jax
import jax.numpy as jnp
from jax.experimental import pallas as pl
from jax.experimental.pallas import tpu as pltpu


def _cvt_kernel(top_ref, k_ref, vt_ref, wq_ref, bq_ref, out_ref):
    """One (batch, query-tile) grid step; stateless (no scratch, no pl.when)."""
    top = top_ref[...]                                                   # (C, tq) f32

    # Q projection on the MXU (bf16 operands, f32 accumulate), bias add in f32.
    q = jnp.dot(wq_ref[...], top.astype(jnp.bfloat16),
                preferred_element_type=jnp.float32) + bq_ref[...]        # (C8, tq) f32

    # energy[i, j] = <q[:, i], k[:, j]>.  Only the small per-tile q is
    # transposed (C8 x tq -> tq x C8); the large K block is used as-is.
    q_t = q.T.astype(jnp.bfloat16)                                       # (tq, C8)
    energy = jnp.dot(q_t, k_ref[...],
                     preferred_element_type=jnp.float32)                 # (tq, Nk)

    # Exact row softmax over the (unpadded) key axis, in f32 on the VPU/EUP.
    m = jnp.max(energy, axis=-1, keepdims=True)
    p = jnp.exp(energy - m)                                              # (tq, Nk) f32
    inv = pl.reciprocal(jnp.sum(p, axis=-1, keepdims=True), approx=True) # (tq, 1)

    # Un-normalized probabilities feed the MXU; V^T (Nk, C) makes this a plain
    # NN matmul -> (tq, C).  Normalize the small f32 accumulator afterwards.
    t = jnp.dot(p.astype(jnp.bfloat16), vt_ref[...],
                preferred_element_type=jnp.float32)                      # (tq, C)
    t = t * inv

    # Transpose only the small (tq, C) result back to channel-major (C, tq).
    out_ref[...] = (top + t.T).astype(out_ref.dtype)


def cross_view_transformer(topview, sideview, params):
    """topview, sideview: (B, C, W, H) float32 (PyTorch NCHW convention)."""
    B, C, W, H = topview.shape
    N = W * H
    C8 = C // 8

    # NCHW -> (B, C, N) is a pure reshape: no transpose, no extra HBM pass.
    top_cn = topview.reshape(B, C, N)
    side_cn = sideview.reshape(B, C, N)

    # Query conv params (bf16 weight for the MXU, f32 bias for the f32 acc).
    wq = params["wq"].astype(jnp.bfloat16)                 # (C8, C)
    bq = params["bq"].reshape(C8, 1).astype(jnp.float32)   # (C8, 1)

    # K / V 1x1 convs hoisted out of the kernel: computed once per batch in f32
    # by plain XLA, then cast to bf16 MXU operands.  V is pre-transposed.
    wk, bk = params["wk"], params["bk"]
    wv, bv = params["wv"], params["bv"]
    k_all = (jnp.einsum("oc,bcn->bon", wk, side_cn)
             + bk[None, :, None]).astype(jnp.bfloat16)     # (B, C8, N)
    vt_all = (jnp.einsum("oc,bcn->bno", wv, side_cn)
              + bv[None, None, :]).astype(jnp.bfloat16)    # (B, N, C)

    # Query-axis tiling: multiples of 256 preferred (v6e/v7x 256-wide MXU),
    # 128 acceptable (v5e).  Unaligned N -> pad the QUERY axis only (keys stay
    # unpadded so softmax is exact); padded output columns are sliced off.
    tq = None
    for cand in (512, 256, 128):
        if N % cand == 0:
            tq = cand
            break
    if tq is None:
        tq = 256 if N >= 256 else 128
    # Keep ~3 live (tq, N) f32 intermediates within a conservative VMEM budget.
    while tq > 128 and 3 * tq * N * 4 > 24 * 1024 * 1024:
        tq //= 2
    n_pad = pl.cdiv(N, tq) * tq
    nq = n_pad // tq
    top_in = top_cn if n_pad == N else jnp.pad(
        top_cn, ((0, 0), (0, 0), (0, n_pad - N)))

    const2 = lambda shape: pl.BlockSpec(shape, lambda b, qi: (0, 0))

    out_cn = pl.pallas_call(
        _cvt_kernel,
        out_shape=jax.ShapeDtypeStruct((B, C, n_pad), topview.dtype),
        grid_spec=pltpu.PrefetchScalarGridSpec(
            num_scalar_prefetch=0,
            grid=(B, nq),
            in_specs=[
                pl.BlockSpec((None, C, tq), lambda b, qi: (b, 0, qi)),   # top tile (f32)
                pl.BlockSpec((None, C8, N), lambda b, qi: (b, 0, 0)),    # K (bf16)
                pl.BlockSpec((None, N, C), lambda b, qi: (b, 0, 0)),     # V^T (bf16)
                const2((C8, C)),                                          # Wq (bf16)
                const2((C8, 1)),                                          # bq (f32)
            ],
            out_specs=pl.BlockSpec((None, C, tq), lambda b, qi: (b, 0, qi)),
        ),
        compiler_params=pltpu.CompilerParams(
            # Every grid step is independent -> both axes parallel (megacore).
            dimension_semantics=("parallel", "parallel"),
            # 48 MiB: above the default scoped limits on v5e/v6e, with
            # headroom under v7x's 64 MiB physical VMEM.
            vmem_limit_bytes=48 * 1024 * 1024,
        ),
    )(top_in, k_all, vt_all, wq, bq)

    if n_pad != N:
        out_cn = out_cn[:, :, :N]
    # (B, C, N) -> NCHW: pure reshape again.
    return out_cn.reshape(B, C, W, H)


def init_params(key, in_dim):
    """Deterministic synthetic params mirroring CrossViewTransformer.__init__."""
    c8 = in_dim // 8
    ks = jax.random.split(key, 12)
    u = lambda k, shape, s=0.1: jax.random.uniform(k, shape, jnp.float32, -s, s)
    params = {
        # conv weights stored as (out_channels, in_channels) -- 1x1 kernels
        "wq": u(ks[0], (c8, in_dim)), "bq": u(ks[1], (c8,)),
        "wk": u(ks[2], (c8, in_dim)), "bk": u(ks[3], (c8,)),
        "wv": u(ks[4], (in_dim, in_dim)), "bv": u(ks[5], (in_dim,)),
        # unused in forward (down_conv + learned pos embedding), kept for parity
        "w_down": u(ks[6], (in_dim // 2, in_dim)), "b_down": u(ks[7], (in_dim // 2,)),
        "row_embed": jax.random.uniform(ks[8], (80, in_dim // 2), jnp.float32),
        "col_embed": jax.random.uniform(ks[9], (80, in_dim // 2), jnp.float32),
    }
    return params


def _reference(topview, sideview, params):
    """Pure-JAX f32 reference replicating the PyTorch forward exactly."""
    B, C, W, H = topview.shape
    N = W * H
    conv1x1 = lambda x, w, b: jnp.einsum("bcn,oc->bon", x.reshape(B, C, N), w) + b[None, :, None]
    q = jnp.transpose(conv1x1(topview, params["wq"], params["bq"]), (0, 2, 1))   # (B,N,C8)
    k = conv1x1(sideview, params["wk"], params["bk"])                            # (B,C8,N)
    v = jnp.transpose(conv1x1(sideview, params["wv"], params["bv"]), (0, 2, 1))  # (B,N,C)
    e = jax.nn.softmax(jnp.einsum("bnc,bcm->bnm", q, k), axis=2)
    t = jnp.einsum("bnm,bmc->bnc", e, v)
    t = jnp.transpose(t, (0, 2, 1)).reshape(B, C, W, H)
    return topview + t


if __name__ == "__main__":
    B, C, W, H = 2, 32, 8, 8   # in_dim=32 -> C//8 = 4; N = 64
    key = jax.random.PRNGKey(0)
    k_top, k_side, k_par = jax.random.split(key, 3)

    topview = jax.random.normal(k_top, (B, C, W, H), jnp.float32)
    sideview = jax.random.normal(k_side, (B, C, W, H), jnp.float32)
    params = init_params(k_par, C)

    out = cross_view_transformer(topview, sideview, params)
    out = jax.block_until_ready(out)

    ref = _reference(topview, sideview, params)
    assert out.shape == (B, C, W, H)
    # bf16 MXU operands + approx reciprocal -> loosened tolerance vs f32 reference
    assert jnp.allclose(out, ref, atol=2e-2, rtol=2e-2), "mismatch vs reference"

    print("KERNEL_OK")
</pallas_src>

<mosaic_0001>
module attributes {stable_mosaic.version = 11 : i64} {
  func.func @_cvt_kernel(%arg0: i32, %arg1: i32, %arg2: memref<1x32x128xf32, #tpu.memory_space<vmem>>, %arg3: memref<1x4x64xbf16, #tpu.memory_space<vmem>>, %arg4: memref<1x64x32xbf16, #tpu.memory_space<vmem>>, %arg5: memref<4x32xbf16, #tpu.memory_space<vmem>>, %arg6: memref<4x1xf32, #tpu.memory_space<vmem>>, %arg7: memref<1x32x128xf32, #tpu.memory_space<vmem>>) attributes {dimension_semantics = [#tpu.dimension_semantics<parallel>, #tpu.dimension_semantics<parallel>], iteration_bounds = array<i64: 2, 1>, scalar_prefetch = 0 : i64, scratch_operands = 0 : i64, tpu.core_type = #tpu.core_type<tc>, window_params = [{transform_indices = @transform_0, window_bounds = array<i64: 1, 32, 128>}, {transform_indices = @transform_1, window_bounds = array<i64: 1, 4, 64>}, {transform_indices = @transform_2, window_bounds = array<i64: 1, 64, 32>}, {pipeline_mode = #tpu.pipeline_mode<synchronous>, transform_indices = @transform_3, window_bounds = array<i64: 4, 32>}, {pipeline_mode = #tpu.pipeline_mode<synchronous>, transform_indices = @transform_4, window_bounds = array<i64: 4, 1>}, {transform_indices = @transform_5, window_bounds = array<i64: 1, 32, 128>}]} {
    %c0 = arith.constant 0 : index
    %c0_0 = arith.constant 0 : index
    %c0_1 = arith.constant 0 : index
    %0 = vector.load %arg2[%c0, %c0_0, %c0_1] : memref<1x32x128xf32, #tpu.memory_space<vmem>>, vector<1x32x128xf32>
    %1 = vector.shape_cast %0 : vector<1x32x128xf32> to vector<32x128xf32>
    %c0_2 = arith.constant 0 : index
    %c0_3 = arith.constant 0 : index
    %2 = vector.load %arg5[%c0_2, %c0_3] : memref<4x32xbf16, #tpu.memory_space<vmem>>, vector<4x32xbf16>
    %3 = arith.truncf %1 : vector<32x128xf32> to vector<32x128xbf16>
    %cst = arith.constant dense<0.000000e+00> : vector<4x128xf32>
    %4 = tpu.matmul %2, %3, %cst {dimension_numbers = #tpu.dot_dimension_numbers<[1], [0], [0], [1], [0, 0, 1, 1], [], []>} : vector<4x32xbf16>, vector<32x128xbf16>, vector<4x128xf32> -> vector<4x128xf32>
    %c0_4 = arith.constant 0 : index
    %c0_5 = arith.constant 0 : index
    %5 = vector.load %arg6[%c0_4, %c0_5] : memref<4x1xf32, #tpu.memory_space<vmem>>, vector<4x1xf32>
    %6 = vector.broadcast %5 : vector<4x1xf32> to vector<4x128xf32>
    %7 = arith.addf %4, %6 : vector<4x128xf32>
    %8 = tpu.transpose %7, [1, 0] : vector<4x128xf32> -> vector<128x4xf32>
    %9 = arith.truncf %8 : vector<128x4xf32> to vector<128x4xbf16>
    %c0_6 = arith.constant 0 : index
    %c0_7 = arith.constant 0 : index
    %c0_8 = arith.constant 0 : index
    %10 = vector.load %arg3[%c0_6, %c0_7, %c0_8] : memref<1x4x64xbf16, #tpu.memory_space<vmem>>, vector<1x4x64xbf16>
    %11 = vector.shape_cast %10 : vector<1x4x64xbf16> to vector<4x64xbf16>
    %cst_9 = arith.constant dense<0.000000e+00> : vector<128x64xf32>
    %12 = tpu.matmul %9, %11, %cst_9 {dimension_numbers = #tpu.dot_dimension_numbers<[1], [0], [0], [1], [0, 0, 1, 1], [], []>} : vector<128x4xbf16>, vector<4x64xbf16>, vector<128x64xf32> -> vector<128x64xf32>
    %cst_10 = arith.constant dense<0xFF800000> : vector<128xf32>
    %13 = vector.multi_reduction <maximumf>, %12, %cst_10 [1] : vector<128x64xf32> to vector<128xf32>
    %14 = vector.shape_cast %13 : vector<128xf32> to vector<128x1xf32>
    %15 = vector.broadcast %14 : vector<128x1xf32> to vector<128x64xf32>
    %16 = arith.subf %12, %15 : vector<128x64xf32>
    %17 = math.exp %16 : vector<128x64xf32>
    %cst_11 = arith.constant dense<0.000000e+00> : vector<128xf32>
    %18 = vector.multi_reduction <add>, %17, %cst_11 [1] : vector<128x64xf32> to vector<128xf32>
    %19 = vector.shape_cast %18 : vector<128xf32> to vector<128x1xf32>
    %20 = tpu.reciprocal %19 {approx = true} : vector<128x1xf32> -> vector<128x1xf32>
    %21 = arith.truncf %17 : vector<128x64xf32> to vector<128x64xbf16>
    %c0_12 = arith.constant 0 : index
    %c0_13 = arith.constant 0 : index
    %c0_14 = arith.constant 0 : index
    %22 = vector.load %arg4[%c0_12, %c0_13, %c0_14] : memref<1x64x32xbf16, #tpu.memory_space<vmem>>, vector<1x64x32xbf16>
    %23 = vector.shape_cast %22 : vector<1x64x32xbf16> to vector<64x32xbf16>
    %cst_15 = arith.constant dense<0.000000e+00> : vector<128x32xf32>
    %24 = tpu.matmul %21, %23, %cst_15 {dimension_numbers = #tpu.dot_dimension_numbers<[1], [0], [0], [1], [0, 0, 1, 1], [], []>} : vector<128x64xbf16>, vector<64x32xbf16>, vector<128x32xf32> -> vector<128x32xf32>
    %25 = vector.broadcast %20 : vector<128x1xf32> to vector<128x32xf32>
    %26 = arith.mulf %24, %25 : vector<128x32xf32>
    %27 = tpu.transpose %26, [1, 0] : vector<128x32xf32> -> vector<32x128xf32>
    %28 = arith.addf %1, %27 : vector<32x128xf32>
    %c0_16 = arith.constant 0 : index
    %c0_17 = arith.constant 0 : index
    %c0_18 = arith.constant 0 : index
    %29 = vector.load %arg7[%c0_16, %c0_17, %c0_18] : memref<1x32x128xf32, #tpu.memory_space<vmem>>, vector<1x32x128xf32>
    %30 = vector.shape_cast %29 : vector<1x32x128xf32> to vector<32x128xf32>
    %31 = vector.shape_cast %28 : vector<32x128xf32> to vector<1x32x128xf32>
    tpu.vector_store %arg7[%c0_16, %c0_17, %c0_18], %31 {strides = array<i32>} : memref<1x32x128xf32, #tpu.memory_space<vmem>>, vector<1x32x128xf32>,
    return
  }
  func.func @transform_0(%arg0: i32, %arg1: i32) -> (i32, i32, i32) {
    %c0_i32 = arith.constant 0 : i32
    %c0_i32_0 = arith.constant 0 : i32
    return %arg0, %c0_i32, %arg1 : i32, i32, i32
  }
  func.func @transform_1(%arg0: i32, %arg1: i32) -> (i32, i32, i32) {
    %c0_i32 = arith.constant 0 : i32
    %c0_i32_0 = arith.constant 0 : i32
    %c0_i32_1 = arith.constant 0 : i32
    return %arg0, %c0_i32, %c0_i32_0 : i32, i32, i32
  }
  func.func @transform_2(%arg0: i32, %arg1: i32) -> (i32, i32, i32) {
    %c0_i32 = arith.constant 0 : i32
    %c0_i32_0 = arith.constant 0 : i32
    %c0_i32_1 = arith.constant 0 : i32
    return %arg0, %c0_i32, %c0_i32_0 : i32, i32, i32
  }
  func.func @transform_3(%arg0: i32, %arg1: i32) -> (i32, i32) {
    %c0_i32 = arith.constant 0 : i32
    %c0_i32_0 = arith.constant 0 : i32
    %c0_i32_1 = arith.constant 0 : i32
    return %c0_i32, %c0_i32_0 : i32, i32
  }
  func.func @transform_4(%arg0: i32, %arg1: i32) -> (i32, i32) {
    %c0_i32 = arith.constant 0 : i32
    %c0_i32_0 = arith.constant 0 : i32
    %c0_i32_1 = arith.constant 0 : i32
    return %c0_i32, %c0_i32_0 : i32, i32
  }
  func.func @transform_5(%arg0: i32, %arg1: i32) -> (i32, i32, i32) {
    %c0_i32 = arith.constant 0 : i32
    %c0_i32_0 = arith.constant 0 : i32
    return %arg0, %c0_i32, %arg1 : i32, i32, i32
  }
}

</mosaic_0001>

<bundles_post_ra>
// kernel: tpu_custom_call.1
= control target key start
LH: loop header
LB: loop body
LE: loop exit
PB: predicated region body
PF: predicated region fallthrough
CT: control target
= control target key end

     0   :  { %10 = vsyncpa [#allocation3], 0  ;;  %s1626_s0 = inlined_call_operand.vmem [shape: f32[2,32,128], index: 0, kind: input, shape index: {}]   ;;  %s1627_s1 = inlined_call_operand.vmem [shape: bf16[2,4,64], index: 1, kind: input, shape index: {}]   ;;  %s1628_s2 = inlined_call_operand.vmem [shape: bf16[2,64,32], index: 2, kind: input, shape index: {}]   ;;  %s1629_s3 = inlined_call_operand.vmem [shape: bf16[4,32], index: 3, kind: input, shape index: {}]   ;;  %s1630_s4 = inlined_call_operand.vmem [shape: f32[4,1], index: 4, kind: input, shape index: {}]   ;;  %s1631_s5 = inlined_call_operand.hbm [shape: f32[2,32,128], index: 5, kind: output, shape index: {}]  }
   0x1   :  { %12 = vsyncpa [#allocation3 + $0x1], 0  ;;  %s1365_s18 = smov 0   ;;  %s1367_s19 = smov 0  }
   0x2   :  { %s1369_s20 = smov 0   ;;  %s1371_s21 = smov 0  }
   0x3   :  { %s1373_s22 = smov 0   ;;  %s1375_s23 = smov 0  }
   0x4 LB: > { %s1005_s24 = sadd.s32 4294967295, %s1327_s23   ;;  %s1006_s25 = sadd.s32 4294967294, %s1327_s23   ;;  %s1327_s23 = sphi %s1375_s23, %s18_s23   ;;  %s1323_s22 = sphi %s1373_s22, %s1638_s22   ;;  %s1319_s21 = sphi %s1371_s21, %s1637_s21   ;;  %s1315_s20 = sphi %s1369_s20, %s1636_s20   ;;  %s1311_s19 = sphi %s1367_s19, %s1635_s19   ;;  %s1307_s18 = sphi %s1365_s18, %s1634_s18  }
   0x5   : > { %s30_s26 = sadd.s32 1, %s1323_s22  ;;  %s161_s27 = sadd.s32 1, %s1315_s20 }
   0x6   : > { %p32_p0 = scmp.ge.s32.totalorder %s30_s26, 2  ;;  %p171_p1 = scmp.ne.s32.totalorder %s1315_s20, %s1311_s19 }
   0x7   : > { %p172_p2 = scmp.eq.s32.totalorder %s1005_s24, 1  ;;  %p177_p3 = scmp.ne.s32.totalorder %s1311_s19, %s1307_s18 }
   0x8   : > { %s1640_s26 = smov (%p32_p0, %s30_s26), 0  ;;  %p178_p5 = scmp.eq.s32.totalorder %s1006_s25, 1 }
   0x9   : > { %p1405_p4 = por %p172_p2, %p171_p1  ;;  %s156_s29 = ssub.s32 %s1323_s22, %s1640_s26 }
   0xa   : > { %p1009_p6 = scmp.ge.s32.totalorder %s1327_s23, 1  ;;  %p159_p7 = scmp.eq.s32.totalorder %s156_s29, 0 }
   0xb   : > { %p1412_p8 = por %p178_p5, %p177_p3  ;;  %p228_p9 = scmp.lt.s32.totalorder %s1327_s23, 3 }
   0xc   : > { %s1418_s6 = scalar_select %p159_p7, %s1315_s20, %s161_s27  }
   0xd   : > { %p229_p10 = pnand %p1009_p6, %p228_p9 }
   0xe   : > { %p268_p11 = scmp.lt.s32.totalorder (!%p229_p10), %s1319_s21, 1  ;;  %v1329_v0 = vmov (!%p229_p10), 0.0   ;;  %vm1330_vm0 = vmmov (!%p229_p10), 0   ;;  %v293_v1 = vld [vmem:[%s1630_s4] sm:$0xf] (!%p229_p10)  ;;  %v1331_v2 = vmov (!%p229_p10), 0  }
   0xf   : > { %232 = sbr.rel (%p229_p10) target bundleno = 1151 (0x47f), region = 40  ;;  %1069 = vmatprep.subr.bf16.mxu1 (!%p229_p10), %v1329_v0  ;;  %1073 = vmatprep.mubr.msk.bf16.mxu1 (!%p229_p10), %vm1330_vm0, %v1329_v0  ;;  %v290_v9 = vld [vmem:[%s1629_s3] sm:$0x3] (!%p229_p10)  ;;  %vm299_vm1 = vcmask (!%p229_p10), 261120   ;;  %vm409_vm2 = vcmask (!%p229_p10), 1041408   ;;  %vm384_vm3 = vcmask (!%p229_p10), 31744  }
  0x10   : > { %1180 = vset.pattern.permute.xlu0 (!%p229_p10), %v1331_v2  ;;  %vm510_vm4 = vcmask (!%p229_p10), 523264   ;;  %s265_s8 = sand.u32 (!%p229_p10), 1, %s1311_s19   ;;  %s1044_s12 = sshll.u32 (!%p229_p10), %s1319_s21, 9 }
  0x11   : > { %296 = vperm.xlu0 (!%p229_p10), %1180, %v293_v1   ;;  %s1577_s15 = scalar_lea.hbm (!%p229_p10), %s1631_s5, %s1044_s12 }
  0x16   : > { %s1425_s9 = scalar_select %p268_p11, %s1319_s21, 1 }
  0x17   : > { %s1332_s21 = smov [#allocation2]  }
  0x18   : > { %s1042_s10 = sshll.u32 %s1425_s9, 5  ;;  %s1013_s25 = sshll.u32 %s1425_s9, 1 }
  0x19   : > { %s275_s13 = scalar_lea.vmem %s1626_s0, %s1042_s10  ;;  %s1434_s16 = scalar_lea.vmem %s1628_s2, %s1042_s10 }
  0x1a   : > { %v1436_v3 = vld [vmem:[%s275_s13] sm:$0xff]  ;;  %v1438_v4 = vld [vmem:[%s275_s13 + $0x8] sm:$0xff]  ;;  %v1440_v5 = vld [vmem:[%s275_s13 + $0x10] sm:$0xff]  ;;  %s279_s7 = scalar_lea.vmem %s1627_s1, %s1013_s25  ;;  %s1010_s9 = sshll.u32 %s265_s8, 5 }
  0x1b   : > { %v291_v6 = vpack.c.bf16 %v1438_v4, %v1436_v3  ;;  %v1444_v7 = vld [vmem:[%s275_s13 + $0x18] sm:$0xff]  ;;  %v383_v16 = vld [vmem:[%s279_s7] sm:$0x3]  ;;  %v1182_v60 = vld [vmem:[%s1434_s16 + $0x8] sm:$0xff]   ;;  %s267_s10 = scalar_lea.vmem [#allocation2], %s1010_s9  ;;  %s1253_s24 = sshll.u32 %s1332_s21, 4  ;;  %s1254_s24 = int_to_ptr.vmem [resolvable:$false] %s1253_s24 }
  0x1c   : > { %v292_v8 = vpack.c.bf16 %v1444_v7, %v1440_v5  ;;  %v411_v17 = vsel %vm409_vm2, %v383_v16, 0  ;;  %v1181_v57 = vld [vmem:[%s1434_s16] sm:$0xff]   ;;  %v1183_v2 = vld [vmem:[%s1434_s16 + $0x10] sm:$0xff]   ;;  %s903_s11 = sshll.u32 %s267_s10, 4  ;;  %s1255_s25 = scalar_lea.vmem %s1254_s24, 1024  ;;  %s1572_s11 = int_to_ptr.vmem [resolvable:$true] %s903_s11 }
  0x1d   : > { %1070 = vmatpush3.bf16.msra.mxu1 %v291_v6  ;;  %1095 = vmatprep.subr.bf16.mxu0 %v1181_v57  ;;  %s1249_s17 = scalar_lea.vmem %s1572_s11, 512  ;;  %p1256_p1 = scmp.lt.s32.totalorder %s1572_s11, %s1254_s24 }
  0x1e   : > { %1071 = vmatprep.subr.bf16.mxu1 %v1329_v0  ;;  %1096 = vmatpush3.bf16.msra.mxu0 %v1181_v57  ;;  %p1250_p12 = scmp.ne.s32.totalorder %s1572_s11, %s1249_s17  ;;  %p1257_p2 = scmp.lt.s32.totalorder %s1255_s25, %s1249_s17 }
  0x1f   : > { %1097 = vmatprep.subr.bf16.mxu0 %v1182_v60 }
  0x20   : > { %p1251_p13 = pnand %p1250_p12, %p1405_p4  ;;  %p1258_p3 = por %p1257_p2, %p1256_p1 }
  0x21   : > { %1072 = vmatpush3.bf16.msra.mxu1 %v292_v8  ;;  %v1184_v8 = vld [vmem:[%s1434_s16 + $0x18] sm:$0xff]   ;;  %s1580_s16 = scalar_lea.sflag [#allocation3], %s265_s8 }
  0x22   : > { %1119 = vmatprep.subr.msk.bf16.mxu1 %vm409_vm2, %v383_v16  ;;  %1098 = vmatpush3.bf16.msra.mxu0 %v1182_v60  ;;  %p1252_p0 = pneg %p1251_p13 }
  0x23   : > { %1099 = vmatprep.subr.bf16.mxu0 %v1183_v2 }
  0x24   : > { %1074 = vmatmul.mubr.msk.bf16.vlgmr.msra.gmra.mrb[0].mxu1 %vm299_vm1, %v290_v9  ;;  %p1259_p5 = pnand %p1258_p3, %p1252_p0 }
  0x25   : > { %1078 = vmatpush3.bf16.msra.mxu1 %v411_v17 }
  0x26   : > { %1100 = vmatpush3.bf16.msra.mxu0 %v1183_v2 }
  0x27   : > { %1101 = vmatprep.subr.bf16.mxu0 %v1184_v8 }
  0x2a   : > { %1102 = vmatpush3.bf16.msra.mxu0 %v1184_v8 }
  0x90   : > { %v297_v10 = vpop.permute.xlu0 %296 }
  0xf7   : > { %v337_v11 = vpop.f32.mrb[0].mxu1 }
  0xf8   : > { %v338_v12 = vadd.f32 %v337_v11, %v297_v10  ;;  %v1075_v13 = vpop.f32.mrb[1].mxu1 }
  0xf9   : > { %v340_v14 = vpop.f32.mrb[2].mxu1 }
  0xfa   : > { %343 = vxpose.xlu0.b32.start.end [1/1] (short) %v338_v12, 128  ;;  %v1076_v15 = vpop.f32.mrb[3].mxu1 }
 0x17a   : > { %v359_v18 = vpop.trf.xlu0 }
 0x17e   : > { %v360_v19 = vpop.trf.xlu0 }
 0x17f   : > { %v375_v20 = vpack.c.bf16 %v360_v19, %v359_v18 }
 0x181   : > { %1079 = vmatprep.mubr.msk.bf16.mxu1 %vm384_vm3, %v375_v20 }
 0x182   : > { %v361_v21 = vpop.trf.xlu0 }
 0x186   : > { %v362_v22 = vpop.trf.xlu0 }
 0x187   : > { %v376_v23 = vpack.c.bf16 %v362_v22, %v361_v21 }
 0x189   : > { %1080 = vmatmul.mubr.msk.bf16.vlgmr.msra.gmra.mrb[4].mxu1 %vm384_vm3, %v376_v23 }
 0x18a   : > { %v363_v24 = vpop.trf.xlu0 }
 0x18e   : > { %v364_v25 = vpop.trf.xlu0 }
 0x18f   : > { %v377_v26 = vpack.c.bf16 %v364_v25, %v363_v24 }
 0x191   : > { %1083 = vmatprep.mubr.msk.bf16.mxu1 %vm384_vm3, %v377_v26 }
 0x192   : > { %v365_v27 = vpop.trf.xlu0 }
 0x196   : > { %v366_v28 = vpop.trf.xlu0 }
 0x197   : > { %v378_v29 = vpack.c.bf16 %v366_v28, %v365_v27 }
 0x199   : > { %1084 = vmatmul.mubr.msk.bf16.gmra.mrb[8].mxu1 %vm384_vm3, %v378_v29 }
 0x19a   : > { %v367_v30 = vpop.trf.xlu0 }
 0x19e   : > { %v368_v31 = vpop.trf.xlu0 }
 0x19f   : > { %v379_v32 = vpack.c.bf16 %v368_v31, %v367_v30 }
 0x1a1   : > { %1087 = vmatprep.mubr.msk.bf16.mxu1 %vm384_vm3, %v379_v32 }
 0x1a2   : > { %v369_v33 = vpop.trf.xlu0 }
 0x1a6   : > { %v370_v34 = vpop.trf.xlu0 }
 0x1a7   : > { %v380_v35 = vpack.c.bf16 %v370_v34, %v369_v33 }
 0x1a9   : > { %1088 = vmatmul.mubr.msk.bf16.gmra.mrb[12].mxu1 %vm384_vm3, %v380_v35 }
 0x1aa   : > { %v371_v36 = vpop.trf.xlu0 }
 0x1ae   : > { %v372_v37 = vpop.trf.xlu0 }
 0x1af   : > { %v381_v38 = vpack.c.bf16 %v372_v37, %v371_v36 }
 0x1b1   : > { %1091 = vmatprep.mubr.msk.bf16.mxu1 %vm384_vm3, %v381_v38 }
 0x1b2   : > { %v373_v39 = vpop.trf.xlu0 }
 0x1b6   : > { %v374_v40 = vpop.trf.xlu0 }
 0x1b7   : > { %v382_v41 = vpack.c.bf16 %v374_v40, %v373_v39 }
 0x1b9   : > { %1092 = vmatmul.mubr.msk.bf16.gmra.mrb[16].mxu1 %vm384_vm3, %v382_v41 }
 0x25c   : > { %v1081_v42 = vpop.f32.mrb[4].mxu1 }
 0x25d   : > { %v1463_v43 = vpop.f32.mrb[5].mxu1  ;;  %v517_v44 = vsel %vm510_vm4, %v1081_v42, -inf }
 0x25e   : > { %518 = vmax.xlane.f32.xlu1 %v517_v44  ;;  %v1466_v45 = vpop.f32.mrb[6].mxu1  ;;  %v511_v47 = vsel %vm510_vm4, %v1463_v43, -inf }
 0x25f   : > { %v1468_v46 = vpop.f32.mrb[7].mxu1  ;;  %v520_v48 = vsel %vm510_vm4, %v1466_v45, -inf }
 0x260   : > { %v514_v49 = vsel %vm510_vm4, %v1468_v46, -inf }
 0x262   : > { %512 = vmax.xlane.f32.xlu1 %v511_v47 }
 0x266   : > { %521 = vmax.xlane.f32.xlu1 %v520_v48 }
 0x26a   : > { %515 = vmax.xlane.f32.xlu1 %v514_v49 }
 0x26c   : > { %v1476_v50 = vpop.f32.mrb[8].mxu1 }
 0x26d   : > { %v1478_v51 = vpop.f32.mrb[9].mxu1  ;;  %v529_v52 = vsel %vm510_vm4, %v1476_v50, -inf }
 0x26e   : > { %530 = vmax.xlane.f32.xlu1 %v529_v52  ;;  %v1482_v53 = vpop.f32.mrb[10].mxu1  ;;  %v523_v55 = vsel %vm510_vm4, %v1478_v51, -inf }
 0x26f   : > { %v1484_v54 = vpop.f32.mrb[11].mxu1  ;;  %v532_v56 = vsel %vm510_vm4, %v1482_v53, -inf }
 0x270   : > { %v526_v58 = vsel %vm510_vm4, %v1484_v54, -inf }
 0x272   : > { %524 = vmax.xlane.f32.xlu1 %v523_v55 }
 0x276   : > { %533 = vmax.xlane.f32.xlu1 %v532_v56 }
 0x27a   : > { %527 = vmax.xlane.f32.xlu1 %v526_v58 }
 0x27c   : > { %v1493_v59 = vpop.f32.mrb[12].mxu1 }
 0x27d   : > { %v1496_v61 = vpop.f32.mrb[13].mxu1  ;;  %v541_v6 = vsel %vm510_vm4, %v1493_v59, -inf }
 0x27e   : > { %v1498_v62 = vpop.f32.mrb[14].mxu1  ;;  %v535_v63 = vsel %vm510_vm4, %v1496_v61, -inf }
 0x27f   : > { %536 = vmax.xlane.f32.xlu1 %v535_v63  ;;  %v1502_v0 = vpop.f32.mrb[15].mxu1  ;;  %v544_v9 = vsel %vm510_vm4, %v1498_v62, -inf }
 0x280   : > { %v538_v1 = vsel %vm510_vm4, %v1502_v0, -inf }
 0x281   : > { %539 = vmax.xlane.f32.xlu0 %v538_v1 }
 0x283   : > { %542 = vmax.xlane.f32.xlu1 %v541_v6 }
 0x287   : > { %545 = vmax.xlane.f32.xlu1 %v544_v9 }
 0x28c   : > { %v1512_v10 = vpop.f32.mrb[16].mxu1 }
 0x28d   : > { %v1514_v11 = vpop.f32.mrb[17].mxu1  ;;  %v553_v12 = vsel %vm510_vm4, %v1512_v10, -inf }
 0x28e   : > { %554 = vmax.xlane.f32.xlu1 %v553_v12  ;;  %v1518_v13 = vpop.f32.mrb[18].mxu1  ;;  %v547_v15 = vsel %vm510_vm4, %v1514_v11, -inf }
 0x28f   : > { %v1520_v14 = vpop.f32.mrb[19].mxu1  ;;  %v556_v17 = vsel %vm510_vm4, %v1518_v13, -inf }
 0x290   : > { %v550_v16 = vsel %vm510_vm4, %v1520_v14, -inf }
 0x292   : > { %548 = vmax.xlane.f32.xlu1 %v547_v15 }
 0x296   : > { %551 = vmax.xlane.f32.xlu1 %v550_v16 }
 0x29a   : > { %557 = vmax.xlane.f32.xlu1 %v556_v17 }
 0x2eb   : > { %v519_v18 = vpop.xlane.xlu1 %518 }
 0x2ec   : > { %v561_v19 = vsub.f32 %v1081_v42, %v519_v18 }
 0x2ee   : > { %v579_v20 = vmul.f32 1.442695, %v561_v19 }
 0x2ef   : > { %v513_v21 = vpop.xlane.xlu1 %512 }
 0x2f0   : > { %1185 = vpow2.f32 %v579_v20  ;;  %v559_v22 = vsub.f32 %v1463_v43, %v513_v21 }
 0x2f2   : > { %v575_v23 = vmul.f32 1.442695, %v559_v22 }
 0x2f3   : > { %v522_v24 = vpop.xlane.xlu1 %521 }
 0x2f4   : > { %1187 = vpow2.f32 %v575_v23  ;;  %v562_v25 = vsub.f32 %v1466_v45, %v522_v24 }
 0x2f6   : > { %v581_v26 = vmul.f32 1.442695, %v562_v25 }
 0x2f7   : > { %v516_v27 = vpop.xlane.xlu1 %515 }
 0x2f8   : > { %1189 = vpow2.f32 %v581_v26  ;;  %v560_v28 = vsub.f32 %v1468_v46, %v516_v27 }
 0x2fa   : > { %v1186_v29 = vpop.eup %1185  ;;  %v577_v30 = vmul.f32 1.442695, %v560_v28 }
 0x2fb   : > { %v531_v31 = vpop.xlane.xlu1 %530  ;;  %v613_v32 = vsel %vm510_vm4, %v1186_v29, 0.0 }
 0x2fc   : > { %1191 = vpow2.f32 %v577_v30  ;;  %v565_v33 = vsub.f32 %v1476_v50, %v531_v31  ;;  %614 = vadd.xlane.f32.xlu1 %v613_v32 }
 0x2fe   : > { %v1188_v34 = vpop.eup %1187  ;;  %v587_v35 = vmul.f32 1.442695, %v565_v33 }
 0x2ff   : > { %v525_v36 = vpop.xlane.xlu1 %524  ;;  %v607_v37 = vsel %vm510_vm4, %v1188_v34, 0.0 }
 0x300   : > { %1193 = vpow2.f32 %v587_v35  ;;  %v563_v38 = vsub.f32 %v1478_v51, %v525_v36  ;;  %608 = vadd.xlane.f32.xlu1 %v607_v37 }
 0x302   : > { %v1190_v39 = vpop.eup %1189  ;;  %v583_v40 = vmul.f32 1.442695, %v563_v38 }
 0x303   : > { %v534_v41 = vpop.xlane.xlu1 %533  ;;  %v616_v42 = vsel %vm510_vm4, %v1190_v39, 0.0  ;;  %v672_v43 = vpack.c.bf16 %v1190_v39, %v1186_v29 }
 0x304   : > { %1195 = vpow2.f32 %v583_v40  ;;  %v566_v44 = vsub.f32 %v1482_v53, %v534_v41  ;;  %617 = vadd.xlane.f32.xlu1 %v616_v42 }
 0x306   : > { %v1192_v45 = vpop.eup %1191  ;;  %v589_v46 = vmul.f32 1.442695, %v566_v44 }
 0x307   : > { %v528_v47 = vpop.xlane.xlu1 %527  ;;  %v610_v48 = vsel %vm510_vm4, %v1192_v45, 0.0  ;;  %v671_v49 = vpack.c.bf16 %v1192_v45, %v1188_v34 }
 0x308   : > { %1197 = vpow2.f32 %v589_v46  ;;  %v564_v50 = vsub.f32 %v1484_v54, %v528_v47  ;;  %611 = vadd.xlane.f32.xlu1 %v610_v48 }
 0x309   : > { %1103 = vmatprep.mubr.msk.bf16.mxu0 %vm510_vm4, %v671_v49 }
 0x30a   : > { %v1194_v51 = vpop.eup %1193  ;;  %v585_v52 = vmul.f32 1.442695, %v564_v50  ;;  %1104 = vmatmul.mubr.msk.bf16.vlgmr.msra.gmra.mrb[0].mxu0 %vm510_vm4, %v672_v43 }
 0x30b   : > { %v625_v55 = vsel %vm510_vm4, %v1194_v51, 0.0 }
 0x30c   : > { %1199 = vpow2.f32 %v585_v52  ;;  %v537_v53 = vpop.xlane.xlu1 %536  ;;  %626 = vadd.xlane.f32.xlu1 %v625_v55 }
 0x30d   : > { %v567_v56 = vsub.f32 %v1496_v61, %v537_v53 }
 0x30e   : > { %v1196_v57 = vpop.eup %1195  ;;  %v540_v58 = vpop.xlane.xlu0 %539 }
 0x30f   : > { %v591_v60 = vmul.f32 1.442695, %v567_v56  ;;  %v568_v63 = vsub.f32 %v1502_v0, %v540_v58  ;;  %v619_v54 = vsel %vm510_vm4, %v1196_v57, 0.0 }
 0x310   : > { %v543_v1 = vpop.xlane.xlu1 %542  ;;  %620 = vadd.xlane.f32.xlu1 %v619_v54 }
 0x311   : > { %v593_v2 = vmul.f32 1.442695, %v568_v63  ;;  %v569_v6 = vsub.f32 %v1493_v59, %v543_v1  ;;  %1201 = vpow2.f32 %v591_v60 }
 0x312   : > { %v1198_v8 = vpop.eup %1197 }
 0x313   : > { %1203 = vpow2.f32 %v593_v2  ;;  %v595_v9 = vmul.f32 1.442695, %v569_v6  ;;  %v628_v12 = vsel %vm510_vm4, %v1198_v8, 0.0  ;;  %v674_v15 = vpack.c.bf16 %v1198_v8, %v1194_v51 }
 0x314   : > { %v546_v61 = vpop.xlane.xlu1 %545  ;;  %629 = vadd.xlane.f32.xlu1 %v628_v12 }
 0x315   : > { %1205 = vpow2.f32 %v595_v9  ;;  %v570_v16 = vsub.f32 %v1498_v62, %v546_v61 }
 0x316   : > { %v1200_v0 = vpop.eup %1199 }
 0x317   : > { %v597_v17 = vmul.f32 1.442695, %v570_v16  ;;  %v622_v18 = vsel %vm510_vm4, %v1200_v0, 0.0  ;;  %v673_v19 = vpack.c.bf16 %v1200_v0, %v1196_v57 }
 0x318   : > { %623 = vadd.xlane.f32.xlu1 %v622_v18 }
 0x319   : > { %1207 = vpow2.f32 %v597_v17  ;;  %1107 = vmatprep.mubr.msk.bf16.mxu0 %vm510_vm4, %v673_v19 }
 0x31a   : > { %1108 = vmatmul.mubr.msk.bf16.gmra.mrb[4].mxu0 %vm510_vm4, %v674_v15 }
 0x31b   : > { %v555_v59 = vpop.xlane.xlu1 %554  ;;  %v1202_v20 = vpop.eup %1201 }
 0x31c   : > { %v573_v21 = vsub.f32 %v1512_v10, %v555_v59  ;;  %v631_v10 = vsel %vm510_vm4, %v1202_v20, 0.0 }
 0x31d   : > { %v1204_v22 = vpop.eup %1203 }
 0x31e   : > { %v675_v23 = vpack.c.bf16 %v1204_v22, %v1202_v20  ;;  %v603_v25 = vmul.f32 1.442695, %v573_v21  ;;  %v634_v37 = vsel %vm510_vm4, %v1204_v22, 0.0 }
 0x31f   : > { %v1206_v24 = vpop.eup %1205  ;;  %v549_v62 = vpop.xlane.xlu1 %548 }
 0x320   : > { %v571_v26 = vsub.f32 %v1514_v11, %v549_v62  ;;  %1111 = vmatprep.mubr.msk.bf16.mxu0 %vm510_vm4, %v675_v23  ;;  %v637_v27 = vsel %vm510_vm4, %v1206_v24, 0.0  ;;  %1209 = vpow2.f32 %v603_v25 }
 0x321   : > { %638 = vadd.xlane.f32.xlu1 %v637_v27 }
 0x322   : > { %v599_v29 = vmul.f32 1.442695, %v571_v26 }
 0x323   : > { %v1208_v28 = vpop.eup %1207  ;;  %v552_v30 = vpop.xlane.xlu1 %551 }
 0x324   : > { %v572_v31 = vsub.f32 %v1520_v14, %v552_v30  ;;  %v676_v32 = vpack.c.bf16 %v1208_v28, %v1206_v24  ;;  %1211 = vpow2.f32 %v599_v29  ;;  %v640_v35 = vsel %vm510_vm4, %v1208_v28, 0.0 }
 0x325   : > { %632 = vadd.xlane.f32.xlu1 %v631_v10 }
 0x326   : > { %v601_v33 = vmul.f32 1.442695, %v572_v31  ;;  %1112 = vmatmul.mubr.msk.bf16.gmra.mrb[8].mxu0 %vm510_vm4, %v676_v32 }
 0x327   : > { %v558_v11 = vpop.xlane.xlu1 %557 }
 0x328   : > { %1213 = vpow2.f32 %v601_v33  ;;  %v574_v34 = vsub.f32 %v1518_v13, %v558_v11 }
 0x329   : > { %641 = vadd.xlane.f32.xlu1 %v640_v35 }
 0x32a   : > { %v605_v36 = vmul.f32 1.442695, %v574_v34  ;;  %v1210_v14 = vpop.eup %1209 }
 0x32b   : > { %v649_v38 = vsel %vm510_vm4, %v1210_v14, 0.0 }
 0x32c   : > { %1215 = vpow2.f32 %v605_v36 }
 0x32d   : > { %635 = vadd.xlane.f32.xlu1 %v634_v37 }
 0x32e   : > { %v1212_v39 = vpop.eup %1211 }
 0x32f   : > { %v643_v42 = vsel %vm510_vm4, %v1212_v39, 0.0 }
 0x331   : > { %650 = vadd.xlane.f32.xlu1 %v649_v38 }
 0x332   : > { %v1214_v40 = vpop.eup %1213 }
 0x333   : > { %v677_v41 = vpack.c.bf16 %v1214_v40, %v1212_v39  ;;  %v646_v45 = vsel %vm510_vm4, %v1214_v40, 0.0 }
 0x335   : > { %644 = vadd.xlane.f32.xlu1 %v643_v42  ;;  %1115 = vmatprep.mubr.msk.bf16.mxu0 %vm510_vm4, %v677_v41 }
 0x336   : > { %v1216_v13 = vpop.eup %1215 }
 0x337   : > { %v678_v43 = vpack.c.bf16 %v1216_v13, %v1210_v14  ;;  %v652_v44 = vsel %vm510_vm4, %v1216_v13, 0.0 }
 0x339   : > { %1116 = vmatmul.mubr.msk.bf16.gmra.mrb[12].mxu0 %vm510_vm4, %v678_v43  ;;  %653 = vadd.xlane.f32.xlu1 %v652_v44 }
 0x33d   : > { %647 = vadd.xlane.f32.xlu1 %v646_v45 }
 0x389   : > { %v615_v46 = vpop.xlane.xlu1 %614 }
 0x38d   : > { %v609_v47 = vpop.xlane.xlu1 %608 }
 0x38e   : > { %1217 = vrcp.f32 %v609_v47 }
 0x391   : > { %v618_v48 = vpop.xlane.xlu1 %617 }
 0x395   : > { %v612_v49 = vpop.xlane.xlu1 %611 }
 0x396   : > { %1219 = vrcp.f32 %v612_v49 }
 0x397   : > { %1221 = vrcp.f32 %v615_v46 }
 0x398   : > { %v1218_v57 = vpop.eup %1217  ;;  %1223 = vrcp.f32 %v618_v48 }
 0x399   : > { %v627_v50 = vpop.xlane.xlu1 %626 }
 0x39d   : > { %v621_v51 = vpop.xlane.xlu1 %620 }
 0x39e   : > { %1225 = vrcp.f32 %v621_v51 }
 0x3a0   : > { %v1220_v2 = vpop.eup %1219 }
 0x3a1   : > { %v630_v52 = vpop.xlane.xlu1 %629  ;;  %v1222_v8 = vpop.eup %1221 }
 0x3a2   : > { %v1224_v15 = vpop.eup %1223 }
 0x3a5   : > { %v624_v55 = vpop.xlane.xlu1 %623 }
 0x3a6   : > { %1227 = vrcp.f32 %v624_v55 }
 0x3a7   : > { %1229 = vrcp.f32 %v627_v50 }
 0x3a8   : > { %v1226_v17 = vpop.eup %1225  ;;  %1231 = vrcp.f32 %v630_v52 }
 0x3ae   : > { %v639_v53 = vpop.xlane.xlu1 %638 }
 0x3b0   : > { %v1228_v21 = vpop.eup %1227 }
 0x3b1   : > { %v1230_v24 = vpop.eup %1229 }
 0x3b2   : > { %v633_v1 = vpop.xlane.xlu1 %632  ;;  %v1232_v27 = vpop.eup %1231 }
 0x3b3   : > { %1233 = vrcp.f32 %v633_v1 }
 0x3b6   : > { %v642_v9 = vpop.xlane.xlu1 %641 }
 0x3ba   : > { %v636_v16 = vpop.xlane.xlu1 %635 }
 0x3bb   : > { %1235 = vrcp.f32 %v636_v16 }
 0x3bc   : > { %1237 = vrcp.f32 %v639_v53 }
 0x3bd   : > { %v1234_v10 = vpop.eup %1233  ;;  %1239 = vrcp.f32 %v642_v9 }
 0x3be   : > { %v651_v22 = vpop.xlane.xlu1 %650 }
 0x3c2   : > { %v645_v62 = vpop.xlane.xlu1 %644 }
 0x3c3   : > { %1241 = vrcp.f32 %v645_v62 }
 0x3c5   : > { %v1236_v11 = vpop.eup %1235 }
 0x3c6   : > { %v654_v32 = vpop.xlane.xlu1 %653  ;;  %v1238_v36 = vpop.eup %1237 }
 0x3c7   : > { %v1240_v14 = vpop.eup %1239 }
 0x3ca   : > { %v648_v35 = vpop.xlane.xlu1 %647 }
 0x3cb   : > { %1243 = vrcp.f32 %v648_v35 }
 0x3cc   : > { %1245 = vrcp.f32 %v651_v22 }
 0x3cd   : > { %v1242_v40 = vpop.eup %1241  ;;  %1247 = vrcp.f32 %v654_v32 }
 0x3d5   : > { %v1244_v44 = vpop.eup %1243 }
 0x3d6   : > { %v1246_v46 = vpop.eup %1245 }
 0x3d7   : > { %v1248_v48 = vpop.eup %1247 }
 0x3dd   : > { %v1105_v56 = vpop.f32.mrb[0].mxu0 }
 0x3de   : > { %v769_v58 = vpop.f32.mrb[1].mxu0  ;;  %v834_v12 = vmul.f32 %v1222_v8, %v1105_v56 }
 0x3df   : > { %v832_v60 = vmul.f32 %v1218_v57, %v769_v58  ;;  %v1106_v63 = vpop.f32.mrb[2].mxu0 }
 0x3e0   : > { %v772_v54 = vpop.f32.mrb[3].mxu0  ;;  %v835_v61 = vmul.f32 %v1224_v15, %v1106_v63 }
 0x3e1   : > { %848 = vxpose.xlu1.b32.start [1/16] (narrow) %v832_v60, 32  ;;  %v833_v6 = vmul.f32 %v1220_v2, %v772_v54 }
 0x3e5   : > { %849 = vxpose.xlu1.b32.cont [2/16] (narrow) %v833_v6, 32 }
 0x3e9   : > { %850 = vxpose.xlu1.b32.cont [3/16] (narrow) %v834_v12, 32 }
 0x3ed   : > { %v1109_v0 = vpop.f32.mrb[4].mxu0  ;;  %851 = vxpose.xlu1.b32.cont [4/16] (narrow) %v835_v61, 32 }
 0x3ee   : > { %v785_v18 = vpop.f32.mrb[5].mxu0  ;;  %v838_v25 = vmul.f32 %v1230_v24, %v1109_v0 }
 0x3ef   : > { %v836_v19 = vmul.f32 %v1226_v17, %v785_v18  ;;  %v1110_v59 = vpop.f32.mrb[6].mxu0 }
 0x3f0   : > { %v788_v20 = vpop.f32.mrb[7].mxu0  ;;  %v839_v29 = vmul.f32 %v1232_v27, %v1110_v59 }
 0x3f1   : > { %852 = vxpose.xlu1.b32.cont [5/16] (narrow) %v836_v19, 32  ;;  %v837_v23 = vmul.f32 %v1228_v21, %v788_v20 }
 0x3f5   : > { %853 = vxpose.xlu1.b32.cont [6/16] (narrow) %v837_v23, 32 }
 0x3f9   : > { %v1113_v26 = vpop.f32.mrb[8].mxu0  ;;  %854 = vxpose.xlu1.b32.cont [7/16] (narrow) %v838_v25, 32 }
 0x3fa   : > { %v801_v28 = vpop.f32.mrb[9].mxu0  ;;  %v842_v37 = vmul.f32 %v1238_v36, %v1113_v26 }
 0x3fb   : > { %v1114_v30 = vpop.f32.mrb[10].mxu0  ;;  %v840_v33 = vmul.f32 %v1234_v10, %v801_v28 }
 0x3fc   : > { %v804_v31 = vpop.f32.mrb[11].mxu0  ;;  %v843_v38 = vmul.f32 %v1240_v14, %v1114_v30 }
 0x3fd   : > { %855 = vxpose.xlu1.b32.cont [8/16] (narrow) %v839_v29, 32  ;;  %v841_v34 = vmul.f32 %v1236_v11, %v804_v31 }
 0x401   : > { %856 = vxpose.xlu1.b32.cont [9/16] (narrow) %v840_v33, 32 }
 0x405   : > { %857 = vxpose.xlu1.b32.cont [10/16] (narrow) %v841_v34, 32 }
 0x409   : > { %858 = vxpose.xlu1.b32.cont [11/16] (narrow) %v842_v37, 32 }
 0x40c   : > { %v1117_v39 = vpop.f32.mrb[12].mxu0 }
 0x40d   : > { %v817_v41 = vpop.f32.mrb[13].mxu0  ;;  %859 = vxpose.xlu1.b32.cont [12/16] (narrow) %v843_v38, 32  ;;  %v846_v47 = vmul.f32 %v1246_v46, %v1117_v39 }
 0x40e   : > { %v844_v42 = vmul.f32 %v1242_v40, %v817_v41  ;;  %v1118_v13 = vpop.f32.mrb[14].mxu0 }
 0x40f   : > { %v820_v43 = vpop.f32.mrb[15].mxu0  ;;  %v847_v49 = vmul.f32 %v1248_v48, %v1118_v13 }
 0x410   : > { %v845_v45 = vmul.f32 %v1244_v44, %v820_v43 }
 0x411   : > { %860 = vxpose.xlu1.b32.cont [13/16] (narrow) %v844_v42, 32 }
 0x415   : > { %861 = vxpose.xlu1.b32.cont [14/16] (narrow) %v845_v45, 32 }
 0x419   : > { %862 = vxpose.xlu1.b32.cont [15/16] (narrow) %v846_v47, 32 }
 0x41d   : > { %863 = vxpose.xlu1.b32.end [16/16] (narrow) %v847_v49, 32 }
 0x461   : > { %v864_v50 = vpop.trf.xlu1 }
 0x462   : > { %v880_v51 = vadd.f32 %v864_v50, %v1436_v3 }
 0x464   : > { %884 = vst [vmem:[%s267_s10] sm:$0xff] %v880_v51 }
 0x465   : > { %v865_v52 = vpop.trf.xlu1 }
 0x466   : > { %v881_v55 = vadd.f32 %v865_v52, %v1438_v4 }
 0x468   : > { %885 = vst [vmem:[%s267_s10 + $0x8] sm:$0xff] %v881_v55 }
 0x469   : > { %v866_v53 = vpop.trf.xlu1 }
 0x46a   : > { %v882_v56 = vadd.f32 %v866_v53, %v1440_v5 }
 0x46c   : > { %886 = vst [vmem:[%s267_s10 + $0x10] sm:$0xff] %v882_v56 }
 0x46d   : > { %v867_v57 = vpop.trf.xlu1 }
 0x46e   : > { %v883_v3 = vadd.f32 %v867_v57, %v1444_v7 }
 0x470   : > { %887 = vst [vmem:[%s267_s10 + $0x18] sm:$0xff] %v883_v3 }
 0x471   : > { %1262 = shalt.err (!%p1259_p5)
}
 0x472   : > { %s1263_s27 = scalar_lea.hbm %s1577_s15, 512  ;;  %s1267_s8 = scalar_lea.hbm %s1631_s5, 1024 }
 0x473   : > { %p1264_p6 = scmp.ne.s32.totalorder %s1577_s15, %s1263_s27  ;;  %p1268_p10 = scmp.lt.u32.totalorder %s1577_s15, %s1631_s5 }
 0x474   : > { %p1269_p11 = scmp.lt.u32.totalorder %s1267_s8, %s1263_s27  ;;  %p1271_p13 = scmp.lt.u32.totalorder %s1263_s27, %s1577_s15 }
 0x475   : > { %p1265_p7 = pnand %p1264_p6, %p1405_p4 }
 0x476   : > { %p1270_p12 = por %p1269_p11, %p1268_p10 }
 0x477   : > { %p1266_p9 = pneg %p1265_p7 }
 0x478   : > { %p1272_p0 = por %p1271_p13, %p1270_p12 }
 0x47a   : > { %p1273_p1 = pnand %p1272_p0, %p1266_p9 }
 0x47c   : > { %1276 = shalt.err (!%p1273_p1)
}
 0x47d   : > { %s1333_s12 = smov 128   ;;  %s1334_s13 = smov 8  }
 0x47e   : > { %1120 = dma.vmem_to_hbm [thread:$0]  (%p1405_p4), %s1572_s11, 512, %s1577_s15, %s1580_s16, %s1333_s12, %s1333_s12, %s1334_s13  }
 0x47f PF: > { %p1126_p2 = scmp.ge.s32.totalorder %s1327_s23, 2  ;;  %s918_s14 = sand.u32 1, %s1307_s18  }
 0x480   : > { %s919_s17 = scalar_lea.sflag [#allocation3], %s918_s14 }
 0x481   : > { %p1123_p3 = pnand %p1126_p2, %p1412_p8 }
 0x483   : > { %1302 = dma.done.wait (!%p1123_p3), %s919_s17, 512  }
 0x484   : > { %1304 = vsyncadd (!%p1123_p3), %s919_s17, 4294966784  ;;  %s18_s23 = sadd.s32 1, %s1327_s23   ;;  %s1634_s18 = smov %s1311_s19 }
 0x485   : > { %p15_p5 = scmp.ge.s32.totalorder %s18_s23, 4   ;;  %s1635_s19 = smov %s1315_s20 }
 0x486   : > { %s1636_s20 = smov %s1418_s6  ;;  %s1637_s21 = smov %s1323_s22 }
 0x487   : > { %s1638_s22 = smov %s1640_s26  ;;  %17 = sbr.rel (!%p15_p5) target bundleno = 4 (0x4), region = 81 }
 0x48e   :  { %924 = vsyncpa [#allocation3], 1 }
 0x48f   :  { %926 = vsyncpa [#allocation3 + $0x1], 1 }

</bundles_post_ra>
